<compile_context>
chip_gen: v6e
topology: v6e:2x2x1
jax: 0.10.0
libtpu: 0.0.40
codegen_flags: <defaults>
</compile_context>

<pallas_src>
import jax
import jax.numpy as jnp
from jax.experimental import pallas as pl
from jax.experimental.pallas import tpu as pltpu


# ---------------------------------------------------------------------------
# Kernel: one full residual block per grid step (one packed image-pair/step).
# ---------------------------------------------------------------------------
def residual_block_kernel(x_ref, d1_ref, b1_ref, d2_ref, b2_ref, out_ref):
    x = x_ref[0]                                       # (H, L) float32, L = 2*W*C
    H = x.shape[0]
    row = jax.lax.broadcasted_iota(jnp.int32, x.shape, 0)

    def taps_bf16(inp):
        # up[h] = inp[h-1]  (dy = 0 tap), zero at the top boundary row.
        up = pltpu.roll(inp, shift=1, axis=0)
        up = jnp.where(row == 0, 0.0, up)
        # dn[h] = inp[h+1]  (dy = 2 tap), zero at the bottom boundary row.
        dn = pltpu.roll(inp, shift=H - 1, axis=0)
        dn = jnp.where(row == H - 1, 0.0, dn)
        # Lane-concat at 128-aligned offsets -> (H, 3*L); bf16 MXU operands.
        return jnp.concatenate([up, inp, dn], axis=-1).astype(jnp.bfloat16)

    def conv3x3(inp, d_ref, b_ref):
        # Single K = 3*L matmul per conv; f32 accumulation, f32 bias add.
        return (jnp.dot(taps_bf16(inp), d_ref[...],
                        preferred_element_type=jnp.float32)
                + b_ref[...])

    h1 = jnp.maximum(conv3x3(x, d1_ref, b1_ref), 0.0)           # conv1 + relu
    out = jnp.maximum(conv3x3(h1, d2_ref, b2_ref) + x, 0.0)     # conv2 + res + relu
    out_ref[0] = out.astype(out_ref.dtype)


# ---------------------------------------------------------------------------
# Wrapper-side (one-time) parameter preparation.
# ---------------------------------------------------------------------------
def _band_weights(w_oihw, W):
    # (Cout, Cin, 3, 3) -> list of 3 (W*Cin, W*Cout) banded block-Toeplitz
    # matrices carrying the horizontal taps:
    #   D[dy][u*Cin + ci, w*Cout + co] = w[co, ci, dy, dx]   where u = w+dx-1
    # (out-of-range columns are simply absent = SAME zero padding).
    bands = []
    for dy in range(3):
        cout, cin = w_oihw.shape[0], w_oihw.shape[1]
        d = jnp.zeros((W * cin, W * cout), jnp.float32)
        for dx in range(3):
            tap = w_oihw[:, :, dy, dx].T.astype(jnp.float32)     # (Cin, Cout)
            shift = jnp.eye(W, k=1 - dx, dtype=jnp.float32)      # [u,w]=1 iff u=w+dx-1
            d = d + jnp.kron(shift, tap)
        bands.append(d)
    return bands


def _packed_band_weights(w_oihw, W):
    # Pack two images along lanes: per-dy block-diagonal (2*W*C, 2*W*C), then
    # concatenate the three dy bands along rows -> (3*2*W*C, 2*W*C), bf16.
    bands = _band_weights(w_oihw, W)
    packed = [jnp.kron(jnp.eye(2, dtype=jnp.float32), d) for d in bands]
    return jnp.concatenate(packed, axis=0).astype(jnp.bfloat16)


def residual_block_prepare(w1_oihw, b1, w2_oihw, b2, W):
    C = w1_oihw.shape[0]
    D1 = _packed_band_weights(w1_oihw, W)                 # (3*2*W*C, 2*W*C) bf16
    D2 = _packed_band_weights(w2_oihw, W)
    b1row = jnp.tile(b1.astype(jnp.float32), 2 * W).reshape(1, 2 * W * C)
    b2row = jnp.tile(b2.astype(jnp.float32), 2 * W).reshape(1, 2 * W * C)
    return D1, b1row, D2, b2row


# ---------------------------------------------------------------------------
# Forward pass (takes/returns PyTorch-convention NCHW).
# ---------------------------------------------------------------------------
@jax.jit
def residual_block_forward(x_nchw, D1, b1row, D2, b2row):
    N, C, H, W = x_nchw.shape
    WC = W * C
    L = 2 * WC

    # Pad batch to even so images pair up (removed again at the end).
    Np = N + (N % 2)
    if N % 2:
        x_nchw = jnp.concatenate(
            [x_nchw, jnp.zeros((1, C, H, W), x_nchw.dtype)], axis=0)
    P = Np // 2

    # NCHW -> (Np, H, W*C) row slabs -> lane-packed pairs (P, H, 2*W*C).
    slab = jnp.transpose(x_nchw, (0, 2, 3, 1)).reshape(Np, H, WC)
    xr = slab.reshape(P, 2, H, WC).transpose(0, 2, 1, 3).reshape(P, H, L)

    outr = pl.pallas_call(
        residual_block_kernel,
        out_shape=jax.ShapeDtypeStruct((P, H, L), jnp.float32),
        grid=(P,),
        in_specs=[
            pl.BlockSpec((1, H, L), lambda p: (p, 0, 0)),      # packed x slab
            pl.BlockSpec((3 * L, L), lambda p: (0, 0)),        # conv1 bands (bf16)
            pl.BlockSpec((1, L), lambda p: (0, 0)),            # bias1 row  (f32)
            pl.BlockSpec((3 * L, L), lambda p: (0, 0)),        # conv2 bands (bf16)
            pl.BlockSpec((1, L), lambda p: (0, 0)),            # bias2 row  (f32)
        ],
        out_specs=pl.BlockSpec((1, H, L), lambda p: (p, 0, 0)),
        compiler_params=pltpu.CompilerParams(
            dimension_semantics=("parallel",)),
    )(xr, D1, b1row, D2, b2row)

    # Unpack pairs and return to the PyTorch NCHW output convention.
    out_slab = (outr.reshape(P, H, 2, WC).transpose(0, 2, 1, 3)
                     .reshape(Np, H, W, C))
    return jnp.transpose(out_slab, (0, 3, 1, 2))[:N]


# ---------------------------------------------------------------------------
# Pure-XLA reference for correctness checking.
# ---------------------------------------------------------------------------
def _reference_nchw(x, w1, b1, w2, b2):
    dn = ("NCHW", "OIHW", "NCHW")
    h = jax.lax.conv_general_dilated(x, w1, (1, 1), "SAME",
                                     dimension_numbers=dn)
    h = jnp.maximum(h + b1.reshape(1, -1, 1, 1), 0.0)
    h = jax.lax.conv_general_dilated(h, w2, (1, 1), "SAME",
                                     dimension_numbers=dn)
    return jnp.maximum(h + b2.reshape(1, -1, 1, 1) + x, 0.0)


if __name__ == "__main__":
    N, C, H, W = 2, 4, 16, 16
    key = jax.random.PRNGKey(0)
    kx, kw1, kb1, kw2, kb2 = jax.random.split(key, 5)

    # PyTorch-convention input (NCHW) and weights (OIHW), built deterministically.
    x_nchw = jax.random.normal(kx, (N, C, H, W), jnp.float32)
    w1_oihw = jax.random.normal(kw1, (C, C, 3, 3), jnp.float32) * 0.1
    b1 = jax.random.normal(kb1, (C,), jnp.float32) * 0.1
    w2_oihw = jax.random.normal(kw2, (C, C, 3, 3), jnp.float32) * 0.1
    b2 = jax.random.normal(kb2, (C,), jnp.float32) * 0.1

    params = residual_block_prepare(w1_oihw, b1, w2_oihw, b2, W)
    out = jax.block_until_ready(residual_block_forward(x_nchw, *params))

    ref = _reference_nchw(x_nchw, w1_oihw, b1, w2_oihw, b2)
    assert out.shape == (N, C, H, W)
    # bf16 matmul operands (f32 accumulation) -> relaxed tolerance vs f32 ref.
    max_err = float(jnp.max(jnp.abs(out - ref)))
    assert jnp.allclose(out, ref, atol=5e-2, rtol=5e-2), (
        f"mismatch vs XLA reference, max abs err = {max_err}")

    print("KERNEL_OK")
</pallas_src>

<mosaic_0001>
module attributes {stable_mosaic.version = 11 : i64} {
  func.func @residual_block_kernel(%arg0: i32, %arg1: memref<1x16x128xf32, #tpu.memory_space<vmem>>, %arg2: memref<384x128xbf16, #tpu.memory_space<vmem>>, %arg3: memref<1x128xf32, #tpu.memory_space<vmem>>, %arg4: memref<384x128xbf16, #tpu.memory_space<vmem>>, %arg5: memref<1x128xf32, #tpu.memory_space<vmem>>, %arg6: memref<1x16x128xf32, #tpu.memory_space<vmem>>) attributes {dimension_semantics = [#tpu.dimension_semantics<parallel>], iteration_bounds = array<i64: 1>, scalar_prefetch = 0 : i64, scratch_operands = 0 : i64, tpu.core_type = #tpu.core_type<tc>, window_params = [{transform_indices = @transform_0, window_bounds = array<i64: 1, 16, 128>}, {pipeline_mode = #tpu.pipeline_mode<synchronous>, transform_indices = @transform_1, window_bounds = array<i64: 384, 128>}, {pipeline_mode = #tpu.pipeline_mode<synchronous>, transform_indices = @transform_2, window_bounds = array<i64: 1, 128>}, {pipeline_mode = #tpu.pipeline_mode<synchronous>, transform_indices = @transform_3, window_bounds = array<i64: 384, 128>}, {pipeline_mode = #tpu.pipeline_mode<synchronous>, transform_indices = @transform_4, window_bounds = array<i64: 1, 128>}, {transform_indices = @transform_5, window_bounds = array<i64: 1, 16, 128>}]} {
    %c0 = arith.constant 0 : index
    %c0_0 = arith.constant 0 : index
    %c0_1 = arith.constant 0 : index
    %0 = vector.load %arg1[%c0, %c0_0, %c0_1] : memref<1x16x128xf32, #tpu.memory_space<vmem>>, vector<1x16x128xf32>
    %1 = vector.shape_cast %0 : vector<1x16x128xf32> to vector<16x128xf32>
    %2 = tpu.iota {dimensions = array<i32: 0>} : vector<16x128xi32>
    %c1_i32 = arith.constant 1 : i32
    %3 = tpu.dynamic_rotate %1 by %c1_i32 dim 0 : vector<16x128xf32>, i32 -> vector<16x128xf32>
    %c0_i32 = arith.constant 0 : i32
    %4 = vector.broadcast %c0_i32 : i32 to vector<16x128xi32>
    %5 = arith.cmpi eq, %2, %4 : vector<16x128xi32>
    %cst = arith.constant 0.000000e+00 : f32
    %6 = vector.broadcast %cst : f32 to vector<16x128xf32>
    %7 = arith.select %5, %6, %3 : vector<16x128xi1>, vector<16x128xf32>
    %c15_i32 = arith.constant 15 : i32
    %8 = tpu.dynamic_rotate %1 by %c15_i32 dim 0 : vector<16x128xf32>, i32 -> vector<16x128xf32>
    %c15_i32_2 = arith.constant 15 : i32
    %9 = vector.broadcast %c15_i32_2 : i32 to vector<16x128xi32>
    %10 = arith.cmpi eq, %2, %9 : vector<16x128xi32>
    %cst_3 = arith.constant 0.000000e+00 : f32
    %11 = vector.broadcast %cst_3 : f32 to vector<16x128xf32>
    %12 = arith.select %10, %11, %8 : vector<16x128xi1>, vector<16x128xf32>
    %13 = tpu.concatenate %7, %1, %12 in 1 : vector<16x128xf32>, vector<16x128xf32>, vector<16x128xf32> -> vector<16x384xf32>
    %14 = arith.truncf %13 : vector<16x384xf32> to vector<16x384xbf16>
    %c0_4 = arith.constant 0 : index
    %c0_5 = arith.constant 0 : index
    %15 = vector.load %arg2[%c0_4, %c0_5] : memref<384x128xbf16, #tpu.memory_space<vmem>>, vector<384x128xbf16>
    %cst_6 = arith.constant dense<0.000000e+00> : vector<16x128xf32>
    %16 = tpu.matmul %14, %15, %cst_6 {dimension_numbers = #tpu.dot_dimension_numbers<[1], [0], [0], [1], [0, 0, 1, 1], [], []>} : vector<16x384xbf16>, vector<384x128xbf16>, vector<16x128xf32> -> vector<16x128xf32>
    %c0_7 = arith.constant 0 : index
    %c0_8 = arith.constant 0 : index
    %17 = vector.load %arg3[%c0_7, %c0_8] : memref<1x128xf32, #tpu.memory_space<vmem>>, vector<1x128xf32>
    %18 = vector.broadcast %17 : vector<1x128xf32> to vector<16x128xf32>
    %19 = arith.addf %16, %18 : vector<16x128xf32>
    %cst_9 = arith.constant 0.000000e+00 : f32
    %20 = vector.broadcast %cst_9 : f32 to vector<16x128xf32>
    %21 = arith.maximumf %19, %20 : vector<16x128xf32>
    %c1_i32_10 = arith.constant 1 : i32
    %22 = tpu.dynamic_rotate %21 by %c1_i32_10 dim 0 : vector<16x128xf32>, i32 -> vector<16x128xf32>
    %c0_i32_11 = arith.constant 0 : i32
    %23 = vector.broadcast %c0_i32_11 : i32 to vector<16x128xi32>
    %24 = arith.cmpi eq, %2, %23 : vector<16x128xi32>
    %cst_12 = arith.constant 0.000000e+00 : f32
    %25 = vector.broadcast %cst_12 : f32 to vector<16x128xf32>
    %26 = arith.select %24, %25, %22 : vector<16x128xi1>, vector<16x128xf32>
    %c15_i32_13 = arith.constant 15 : i32
    %27 = tpu.dynamic_rotate %21 by %c15_i32_13 dim 0 : vector<16x128xf32>, i32 -> vector<16x128xf32>
    %c15_i32_14 = arith.constant 15 : i32
    %28 = vector.broadcast %c15_i32_14 : i32 to vector<16x128xi32>
    %29 = arith.cmpi eq, %2, %28 : vector<16x128xi32>
    %cst_15 = arith.constant 0.000000e+00 : f32
    %30 = vector.broadcast %cst_15 : f32 to vector<16x128xf32>
    %31 = arith.select %29, %30, %27 : vector<16x128xi1>, vector<16x128xf32>
    %32 = tpu.concatenate %26, %21, %31 in 1 : vector<16x128xf32>, vector<16x128xf32>, vector<16x128xf32> -> vector<16x384xf32>
    %33 = arith.truncf %32 : vector<16x384xf32> to vector<16x384xbf16>
    %c0_16 = arith.constant 0 : index
    %c0_17 = arith.constant 0 : index
    %34 = vector.load %arg4[%c0_16, %c0_17] : memref<384x128xbf16, #tpu.memory_space<vmem>>, vector<384x128xbf16>
    %cst_18 = arith.constant dense<0.000000e+00> : vector<16x128xf32>
    %35 = tpu.matmul %33, %34, %cst_18 {dimension_numbers = #tpu.dot_dimension_numbers<[1], [0], [0], [1], [0, 0, 1, 1], [], []>} : vector<16x384xbf16>, vector<384x128xbf16>, vector<16x128xf32> -> vector<16x128xf32>
    %c0_19 = arith.constant 0 : index
    %c0_20 = arith.constant 0 : index
    %36 = vector.load %arg5[%c0_19, %c0_20] : memref<1x128xf32, #tpu.memory_space<vmem>>, vector<1x128xf32>
    %37 = vector.broadcast %36 : vector<1x128xf32> to vector<16x128xf32>
    %38 = arith.addf %35, %37 : vector<16x128xf32>
    %39 = arith.addf %38, %1 : vector<16x128xf32>
    %cst_21 = arith.constant 0.000000e+00 : f32
    %40 = vector.broadcast %cst_21 : f32 to vector<16x128xf32>
    %41 = arith.maximumf %39, %40 : vector<16x128xf32>
    %c0_22 = arith.constant 0 : index
    %c0_23 = arith.constant 0 : index
    %c0_24 = arith.constant 0 : index
    %42 = vector.load %arg6[%c0_22, %c0_23, %c0_24] : memref<1x16x128xf32, #tpu.memory_space<vmem>>, vector<1x16x128xf32>
    %43 = vector.shape_cast %42 : vector<1x16x128xf32> to vector<16x128xf32>
    %44 = vector.shape_cast %41 : vector<16x128xf32> to vector<1x16x128xf32>
    tpu.vector_store %arg6[%c0_22, %c0_23, %c0_24], %44 {strides = array<i32>} : memref<1x16x128xf32, #tpu.memory_space<vmem>>, vector<1x16x128xf32>,
    return
  }
  func.func @transform_0(%arg0: i32) -> (i32, i32, i32) {
    %c0_i32 = arith.constant 0 : i32
    %c0_i32_0 = arith.constant 0 : i32
    %c0_i32_1 = arith.constant 0 : i32
    return %arg0, %c0_i32, %c0_i32_0 : i32, i32, i32
  }
  func.func @transform_1(%arg0: i32) -> (i32, i32) {
    %c0_i32 = arith.constant 0 : i32
    %c0_i32_0 = arith.constant 0 : i32
    %c0_i32_1 = arith.constant 0 : i32
    return %c0_i32, %c0_i32_0 : i32, i32
  }
  func.func @transform_2(%arg0: i32) -> (i32, i32) {
    %c0_i32 = arith.constant 0 : i32
    %c0_i32_0 = arith.constant 0 : i32
    %c0_i32_1 = arith.constant 0 : i32
    return %c0_i32, %c0_i32_0 : i32, i32
  }
  func.func @transform_3(%arg0: i32) -> (i32, i32) {
    %c0_i32 = arith.constant 0 : i32
    %c0_i32_0 = arith.constant 0 : i32
    %c0_i32_1 = arith.constant 0 : i32
    return %c0_i32, %c0_i32_0 : i32, i32
  }
  func.func @transform_4(%arg0: i32) -> (i32, i32) {
    %c0_i32 = arith.constant 0 : i32
    %c0_i32_0 = arith.constant 0 : i32
    %c0_i32_1 = arith.constant 0 : i32
    return %c0_i32, %c0_i32_0 : i32, i32
  }
  func.func @transform_5(%arg0: i32) -> (i32, i32, i32) {
    %c0_i32 = arith.constant 0 : i32
    %c0_i32_0 = arith.constant 0 : i32
    %c0_i32_1 = arith.constant 0 : i32
    return %arg0, %c0_i32, %c0_i32_0 : i32, i32, i32
  }
}

</mosaic_0001>

<bundles_post_ra>
// kernel: residual_block_forward.1
= control target key start
LH: loop header
LB: loop body
LE: loop exit
PB: predicated region body
PF: predicated region fallthrough
CT: control target
= control target key end

     0   :  { %v857_v1 = vmov 0.0   ;;  %vm858_vm0 = vmmov 0   ;;  %v23_v15 = vlaneseq  ;;  %vm859_vm5 = vmmov 1   ;;  %s1124_s1 = inlined_call_operand.vmem [shape: bf16[384,128], index: 1, kind: input, shape index: {}]   ;;  %s1125_s0 = inlined_call_operand.vmem [shape: f32[1,16,128], index: 0, kind: input, shape index: {}]   ;;  %s1126_s3 = inlined_call_operand.vmem [shape: bf16[384,128], index: 3, kind: input, shape index: {}]   ;;  %s1127_s2 = inlined_call_operand.vmem [shape: f32[1,128], index: 2, kind: input, shape index: {}]   ;;  %s1128_s4 = inlined_call_operand.vmem [shape: f32[1,128], index: 4, kind: input, shape index: {}]   ;;  %s1129_s5 = inlined_call_operand.vmem [shape: f32[1,16,128], index: 5, kind: output, shape index: {}]  }
   0x1   :  { %v809_v0 = vld [vmem:[%s1124_s1 + $0x78] sm:$0xff]   ;;  %766 = vmatprep.subr.bf16.mxu1 %v857_v1  ;;  %782 = vmatprep.mubr.msk.bf16.mxu1 %vm858_vm0, %v857_v1  ;;  %v812_v4 = vld [vmem:[%s1124_s1 + $0x70] sm:$0xff]   ;;  %v815_v7 = vld [vmem:[%s1124_s1 + $0x68] sm:$0xff]  }
   0x2   :  { %v810_v2 = vld [vmem:[%s1124_s1 + $0x38] sm:$0xff]   ;;  %704 = vmatprep.subr.bf16.mxu0 %v809_v0  ;;  %v813_v5 = vld [vmem:[%s1124_s1 + $0x30] sm:$0xff]   ;;  %v816_v8 = vld [vmem:[%s1124_s1 + $0x28] sm:$0xff]   ;;  %v948_v19 = vshrl.u32 %v23_v15, 7 }
   0x3   :  { %v811_v3 = vld [vmem:[%s1124_s1 + $0xb8] sm:$0xff]   ;;  %705 = vmatpush3.bf16.msra.mxu0 %v810_v2  ;;  %v814_v6 = vld [vmem:[%s1124_s1 + $0xb0] sm:$0xff]   ;;  %v817_v9 = vld [vmem:[%s1124_s1 + $0xa8] sm:$0xff]  }
   0x4   :  { %767 = vmatpush3.bf16.msra.mxu1 %v811_v3  ;;  %706 = vmatprep.subr.bf16.mxu0 %v812_v4  ;;  %v818_v10 = vld [vmem:[%s1124_s1 + $0x60] sm:$0xff]   ;;  %v821_v13 = vld [vmem:[%s1124_s1 + $0x58] sm:$0xff]   ;;  %v824_v17 = vld [vmem:[%s1124_s1 + $0x50] sm:$0xff]   ;;  %v25_v23 = vadd.s32 8, %v948_v19  ;;  %vm28_vm1 = vcmp.lt.s32.totalorder %v948_v19, 1  ;;  %vm702_vm2 = vcmp.ne.s32.totalorder %v948_v19, 0 }
   0x5   :  { %768 = vmatprep.subr.bf16.mxu1 %v857_v1  ;;  %v819_v11 = vld [vmem:[%s1124_s1 + $0x20] sm:$0xff]   ;;  %v822_v14 = vld [vmem:[%s1124_s1 + $0x18] sm:$0xff]   ;;  %v825_v18 = vld [vmem:[%s1124_s1 + $0x10] sm:$0xff]   ;;  %vm37_vm3 = vcmp.lt.s32.totalorder %v948_v19, 7 }
   0x6   :  { %v820_v12 = vld [vmem:[%s1124_s1 + $0xa0] sm:$0xff]   ;;  %v823_v16 = vld [vmem:[%s1124_s1 + $0x98] sm:$0xff]   ;;  %v826_v20 = vld [vmem:[%s1124_s1 + $0x90] sm:$0xff]   ;;  %vm703_vm4 = vcmp.ne.s32.totalorder %v25_v23, 15 }
   0x7   :  { %707 = vmatpush3.bf16.msra.mxu0 %v813_v5  ;;  %v827_v21 = vld [vmem:[%s1124_s1 + $0x48] sm:$0xff]   ;;  %v830_v25 = vld [vmem:[%s1124_s1 + $0x40] sm:$0xff]   ;;  %vm999_vm6 = vmpackc.low %vm859_vm5, %vm702_vm2 }
   0x8   :  { %769 = vmatpush3.bf16.msra.mxu1 %v814_v6  ;;  %708 = vmatprep.subr.bf16.mxu0 %v815_v7  ;;  %v828_v22 = vld [vmem:[%s1124_s1 + $0x8] sm:$0xff]   ;;  %v970_v26 = vld [vmem:[%s1125_s0] sm:$0xff]  ;;  %v833_v40 = vld [vmem:[%s1126_s3 + $0x78] sm:$0xff]  }
   0x9   :  { %770 = vmatprep.subr.bf16.mxu1 %v857_v1  ;;  %v829_v24 = vld [vmem:[%s1124_s1 + $0x88] sm:$0xff]   ;;  %v831_v28 = vld [vmem:[%s1124_s1] sm:$0xff]   ;;  %v26_v29 = vrot.slane %v970_v26, 7  ;;  %v35_v31 = vrot.slane %v970_v26, 1  ;;  %vm1011_vm7 = vmpackc.low %vm703_vm4, %vm859_vm5 }
   0xa   :  { %v975_v27 = vld [vmem:[%s1125_s0 + $0x8] sm:$0xff]  ;;  %v832_v33 = vld [vmem:[%s1124_s1 + $0x80] sm:$0xff]   ;;  %v834_v43 = vld [vmem:[%s1126_s3 + $0x38] sm:$0xff]  }
   0xb   :  { %709 = vmatpush3.bf16.msra.mxu0 %v816_v8  ;;  %v27_v30 = vrot.slane %v975_v27, 7  ;;  %v36_v32 = vrot.slane %v975_v27, 1  ;;  %v45_v34 = vpack.c.bf16 %v975_v27, %v970_v26  ;;  %v835_v45 = vld [vmem:[%s1126_s3 + $0xb8] sm:$0xff]   ;;  %v836_v46 = vld [vmem:[%s1126_s3 + $0x70] sm:$0xff]   ;;  %v839_v49 = vld [vmem:[%s1126_s3 + $0x68] sm:$0xff]  }
   0xc   :  { %771 = vmatpush3.bf16.msra.mxu1 %v817_v9  ;;  %710 = vmatprep.subr.bf16.mxu0 %v818_v10  ;;  %v837_v47 = vld [vmem:[%s1126_s3 + $0x30] sm:$0xff]   ;;  %v840_v50 = vld [vmem:[%s1126_s3 + $0x28] sm:$0xff]   ;;  %v842_v52 = vld [vmem:[%s1126_s3 + $0x60] sm:$0xff]  }
   0xd   :  { %772 = vmatprep.subr.bf16.mxu1 %v857_v1  ;;  %v29_v35 = vsel %vm28_vm1, %v26_v29, %v27_v30  ;;  %v30_v36 = vsel %vm28_vm1, %v27_v30, %v26_v29  ;;  %v38_v38 = vsel %vm37_vm3, %v35_v31, %v36_v32  ;;  %v39_v39 = vsel %vm37_vm3, %v36_v32, %v35_v31  ;;  %v838_v48 = vld [vmem:[%s1126_s3 + $0xb0] sm:$0xff]   ;;  %v841_v51 = vld [vmem:[%s1126_s3 + $0xa8] sm:$0xff]   ;;  %v843_v53 = vld [vmem:[%s1126_s3 + $0x20] sm:$0xff]  }
   0xe   :  { %278 = vmatprep.mubr.bf16.mxu0 %v45_v34  ;;  %v663_v42 = vpack.c.bf16 %v29_v35, %v30_v36  ;;  %v667_v44 = vpack.c.bf16 %v39_v39, %v38_v38  ;;  %v844_v54 = vld [vmem:[%s1126_s3 + $0xa0] sm:$0xff]   ;;  %v845_v55 = vld [vmem:[%s1126_s3 + $0x58] sm:$0xff]   ;;  %v848_v58 = vld [vmem:[%s1126_s3 + $0x50] sm:$0xff]  }
   0xf   :  { %711 = vmatpush3.bf16.msra.mxu0 %v819_v11  ;;  %v846_v56 = vld [vmem:[%s1126_s3 + $0x18] sm:$0xff]   ;;  %v849_v59 = vld [vmem:[%s1126_s3 + $0x10] sm:$0xff]   ;;  %v851_v61 = vld [vmem:[%s1126_s3 + $0x48] sm:$0xff]  }
  0x10   :  { %773 = vmatpush3.bf16.msra.mxu1 %v820_v12  ;;  %712 = vmatprep.subr.bf16.mxu0 %v821_v13  ;;  %v847_v57 = vld [vmem:[%s1126_s3 + $0x98] sm:$0xff]   ;;  %v850_v60 = vld [vmem:[%s1126_s3 + $0x90] sm:$0xff]   ;;  %v852_v62 = vld [vmem:[%s1126_s3 + $0x8] sm:$0xff]  }
  0x11   :  { %774 = vmatprep.subr.bf16.mxu1 %v857_v1  ;;  %v853_v63 = vld [vmem:[%s1126_s3 + $0x88] sm:$0xff]   ;;  %v854_v0 = vld [vmem:[%s1126_s3 + $0x40] sm:$0xff]  }
  0x12   :  { %v855_v2 = vld [vmem:[%s1126_s3] sm:$0xff]  }
  0x13   :  { %713 = vmatpush3.bf16.msra.mxu0 %v822_v14  ;;  %v856_v3 = vld [vmem:[%s1126_s3 + $0x80] sm:$0xff]  }
  0x14   :  { %775 = vmatpush3.bf16.msra.mxu1 %v823_v16  ;;  %714 = vmatprep.subr.bf16.mxu0 %v824_v17  ;;  %v636_v6 = vld [vmem:[%s1127_s2] ss:$0 sm:$0xff] }
  0x15   :  { %776 = vmatprep.subr.bf16.mxu1 %v857_v1  ;;  %v669_v36 = vld [vmem:[%s1128_s4] ss:$0 sm:$0xff] }
  0x17   :  { %715 = vmatpush3.bf16.msra.mxu0 %v825_v18 }
  0x18   :  { %777 = vmatpush3.bf16.msra.mxu1 %v826_v20  ;;  %716 = vmatprep.subr.bf16.mxu0 %v827_v21 }
  0x19   :  { %778 = vmatprep.subr.bf16.mxu1 %v857_v1 }
  0x1b   :  { %717 = vmatpush3.bf16.msra.mxu0 %v828_v22 }
  0x1c   :  { %779 = vmatpush3.bf16.msra.mxu1 %v829_v24  ;;  %718 = vmatprep.subr.bf16.mxu0 %v830_v25 }
  0x1d   :  { %780 = vmatprep.subr.bf16.mxu1 %v857_v1 }
  0x1f   :  { %719 = vmatpush3.bf16.msra.mxu0 %v831_v28 }
  0x20   :  { %781 = vmatpush3.bf16.msra.mxu1 %v832_v33  ;;  %735 = vmatprep.subr.bf16.mxu0 %v833_v40 }
  0x21   :  { %786 = vmatprep.subr.bf16.mxu1 %v857_v1 }
  0x22   :  { %664 = vmatmul.mubr.msk.bf16.vlgmr.msra.gmra.mxu0 %vm999_vm6, %v663_v42 }
  0x23   :  { %783 = vmatmul.mubr.msk.bf16.vlgmr.msra.gmra.mxu1 %vm1011_vm7, %v667_v44  ;;  %736 = vmatpush3.bf16.msra.mxu0 %v834_v43 }
  0x24   :  { %787 = vmatpush3.bf16.msra.mxu1 %v835_v45  ;;  %737 = vmatprep.subr.bf16.mxu0 %v836_v46 }
  0x25   :  { %788 = vmatprep.subr.bf16.mxu1 %v857_v1  ;;  %802 = vmatprep.mubr.msk.bf16.mxu1 %vm858_vm0, %v857_v1 }
  0x27   :  { %738 = vmatpush3.bf16.msra.mxu0 %v837_v47 }
  0x28   :  { %789 = vmatpush3.bf16.msra.mxu1 %v838_v48  ;;  %739 = vmatprep.subr.bf16.mxu0 %v839_v49 }
  0x29   :  { %790 = vmatprep.subr.bf16.mxu1 %v857_v1 }
  0x2b   :  { %740 = vmatpush3.bf16.msra.mxu0 %v840_v50 }
  0x2c   :  { %791 = vmatpush3.bf16.msra.mxu1 %v841_v51  ;;  %741 = vmatprep.subr.bf16.mxu0 %v842_v52 }
  0x2d   :  { %792 = vmatprep.subr.bf16.mxu1 %v857_v1 }
  0x2f   :  { %742 = vmatpush3.bf16.msra.mxu0 %v843_v53 }
  0x30   :  { %793 = vmatpush3.bf16.msra.mxu1 %v844_v54  ;;  %743 = vmatprep.subr.bf16.mxu0 %v845_v55 }
  0x31   :  { %794 = vmatprep.subr.bf16.mxu1 %v857_v1 }
  0x33   :  { %744 = vmatpush3.bf16.msra.mxu0 %v846_v56 }
  0x34   :  { %795 = vmatpush3.bf16.msra.mxu1 %v847_v57  ;;  %745 = vmatprep.subr.bf16.mxu0 %v848_v58 }
  0x35   :  { %796 = vmatprep.subr.bf16.mxu1 %v857_v1 }
  0x37   :  { %746 = vmatpush3.bf16.msra.mxu0 %v849_v59 }
  0x38   :  { %797 = vmatpush3.bf16.msra.mxu1 %v850_v60  ;;  %747 = vmatprep.subr.bf16.mxu0 %v851_v61 }
  0x39   :  { %798 = vmatprep.subr.bf16.mxu1 %v857_v1 }
  0x3b   :  { %748 = vmatpush3.bf16.msra.mxu0 %v852_v62 }
  0x3c   :  { %799 = vmatpush3.bf16.msra.mxu1 %v853_v63  ;;  %749 = vmatprep.subr.bf16.mxu0 %v854_v0 }
  0x3d   :  { %800 = vmatprep.subr.bf16.mxu1 %v857_v1 }
  0x3f   :  { %750 = vmatpush3.bf16.msra.mxu0 %v855_v2 }
  0x40   :  { %801 = vmatpush3.bf16.msra.mxu1 %v856_v3 }
  0xe2   :  { %v720_v4 = vpop.f32.mrf.mxu0 }
  0xe3   :  { %v321_v5 = vpop.f32.mrf.mxu1 }
  0xe4   :  { %v721_v7 = vpop.f32.mrf.mxu0 }
  0xe5   :  { %v722_v8 = vadd.f32 %v721_v7, %v720_v4  ;;  %v784_v1 = vpop.f32.mrf.mxu1 }
  0xe6   :  { %v723_v9 = vpop.f32.mrf.mxu0 }
  0xe7   :  { %v281_v10 = vadd.f32 %v722_v8, %v636_v6  ;;  %v324_v11 = vpop.f32.mrf.mxu1 }
  0xe8   :  { %v724_v12 = vpop.f32.mrf.mxu0 }
  0xe9   :  { %v322_v13 = vadd.f32 %v321_v5, %v281_v10  ;;  %v725_v14 = vadd.f32 %v724_v12, %v723_v9  ;;  %v785_v15 = vpop.f32.mrf.mxu1 }
  0xeb   :  { %v284_v16 = vadd.f32 %v725_v14, %v636_v6  ;;  %v328_v17 = vmax.f32 %v322_v13, 0.0 }
  0xed   :  { %v325_v18 = vadd.f32 %v324_v11, %v284_v16  ;;  %v330_v21 = vrot.slane %v328_v17, 7  ;;  %v336_v22 = vrot.slane %v328_v17, 1 }
  0xef   :  { %v329_v20 = vmax.f32 %v325_v18, 0.0 }
  0xf1   :  { %v331_v23 = vrot.slane %v329_v20, 7  ;;  %v337_v24 = vrot.slane %v329_v20, 1  ;;  %v343_v25 = vpack.c.bf16 %v329_v20, %v328_v17 }
  0xf3   :  { %576 = vmatprep.mubr.bf16.mxu0 %v343_v25  ;;  %v332_v28 = vsel %vm28_vm1, %v330_v21, %v331_v23  ;;  %v333_v29 = vsel %vm28_vm1, %v331_v23, %v330_v21  ;;  %v338_v30 = vsel %vm37_vm3, %v336_v22, %v337_v24  ;;  %v339_v31 = vsel %vm37_vm3, %v337_v24, %v336_v22 }
  0xf4   :  { %v696_v32 = vpack.c.bf16 %v332_v28, %v333_v29  ;;  %v700_v33 = vpack.c.bf16 %v339_v31, %v338_v30 }
  0xf6   :  { %697 = vmatmul.mubr.msk.bf16.vlgmr.msra.gmra.mxu0 %vm999_vm6, %v696_v32  ;;  %803 = vmatmul.mubr.msk.bf16.vlgmr.msra.gmra.mxu1 %vm1011_vm7, %v700_v33 }
 0x1b6   :  { %v751_v34 = vpop.f32.mrf.mxu0  ;;  %v619_v35 = vpop.f32.mrf.mxu1 }
 0x1b8   :  { %v752_v38 = vpop.f32.mrf.mxu0  ;;  %v804_v39 = vpop.f32.mrf.mxu1 }
 0x1b9   :  { %v753_v40 = vadd.f32 %v752_v38, %v751_v34 }
 0x1ba   :  { %v754_v42 = vpop.f32.mrf.mxu0  ;;  %v622_v19 = vpop.f32.mrf.mxu1 }
 0x1bb   :  { %v579_v43 = vadd.f32 %v753_v40, %v669_v36 }
 0x1bc   :  { %v755_v44 = vpop.f32.mrf.mxu0  ;;  %v805_v45 = vpop.f32.mrf.mxu1 }
 0x1bd   :  { %v620_v46 = vadd.f32 %v619_v35, %v579_v43  ;;  %v756_v37 = vadd.f32 %v755_v44, %v754_v42 }
 0x1bf   :  { %v626_v47 = vadd.f32 %v620_v46, %v970_v26  ;;  %v582_v41 = vadd.f32 %v756_v37, %v669_v36 }
 0x1c1   :  { %v628_v48 = vmax.f32 %v626_v47, 0.0  ;;  %v623_v49 = vadd.f32 %v622_v19, %v582_v41 }
 0x1c3   :  { %630 = vst [vmem:[%s1129_s5] sm:$0xff] %v628_v48  ;;  %v627_v50 = vadd.f32 %v623_v49, %v975_v27 }
 0x1c5   :  { %v629_v51 = vmax.f32 %v627_v50, 0.0 }
 0x1c7   :  { %631 = vst [vmem:[%s1129_s5 + $0x8] sm:$0xff] %v629_v51 }

</bundles_post_ra>
